<compile_context>
chip_gen: v7x
topology: tpu7x:2x2x1
jax: 0.10.0
libtpu: 0.0.40
codegen_flags: <defaults>
</compile_context>

<pallas_src>
import functools
import math

import jax
import jax.numpy as jnp
import numpy as np
from jax import lax
from jax.experimental import pallas as pl
from jax.experimental.pallas import tpu as pltpu


# ---------------------------------------------------------------------------
# Kernel 1: GroupNorm statistics -> per-channel (scale, shift)
#   h = scale * x + shift  with  scale = gamma * rsqrt(var_g + eps),
#                                shift = beta - mean_g * scale
# Grid: (N, L // TL); the L axis is a reduction ("arbitrary").
# ---------------------------------------------------------------------------
def _gn_stats_kernel(x_ref, gnw_ref, gnb_ref, gmat_ref, scale_ref, shift_ref,
                     sum_acc, sq_acc, *, inv_count, eps):
    li = pl.program_id(1)

    @pl.when(li == 0)
    def _init():
        sum_acc[...] = jnp.zeros(sum_acc.shape, sum_acc.dtype)
        sq_acc[...] = jnp.zeros(sq_acc.shape, sq_acc.dtype)

    xt = x_ref[0]                                               # (TL, C) f32
    sum_acc[...] += jnp.sum(xt, axis=0, keepdims=True)          # (1, C)
    sq_acc[...] += jnp.sum(xt * xt, axis=0, keepdims=True)      # (1, C)

    @pl.when(li == pl.num_programs(1) - 1)
    def _finalize():
        # fold per-channel sums into per-group sums with a (1,C)@(C,C)
        # group-membership matmul (avoids (G, Cg, L) reshapes / copies).
        g_sum = jnp.dot(sum_acc[...], gmat_ref[...],
                        preferred_element_type=jnp.float32)     # (1, C)
        g_sq = jnp.dot(sq_acc[...], gmat_ref[...],
                       preferred_element_type=jnp.float32)      # (1, C)
        mean = g_sum * inv_count
        # clamp: E[x^2] - mean^2 can cancel to a tiny negative in f32.
        var = jnp.maximum(g_sq * inv_count - mean * mean, 0.0)
        inv_std = lax.rsqrt(var + eps)
        a = gnw_ref[...] * inv_std                              # (1, C)
        scale_ref[0] = a
        shift_ref[0] = gnb_ref[...] - mean * a


# ---------------------------------------------------------------------------
# Kernel 2: apply folded GroupNorm affine + merged K/V 1x1 conv as a single
# (TL, C) @ (C, 2C) MXU matmul. Grid: (N, L // TL), fully parallel.
# (Q projection is fused into the attention kernel, stage 3.)
# ---------------------------------------------------------------------------
def _kv_proj_kernel(x_ref, scale_ref, shift_ref, wkv_ref, bkv_ref,
                    k_ref, v_ref, *, channels):
    h = (x_ref[0] * scale_ref[0] + shift_ref[0]).astype(jnp.bfloat16)   # (TL, C)
    kv = jnp.dot(h, wkv_ref[...],
                 preferred_element_type=jnp.float32) + bkv_ref[...]     # (TL, 2C)
    k_ref[0] = kv[:, :channels].astype(k_ref.dtype)
    v_ref[0] = kv[:, channels:].astype(v_ref.dtype)


# ---------------------------------------------------------------------------
# Kernel 3: fused Q projection + flash-style attention over L + proj 1x1 conv
# + residual. Grid: (N, L // TQ, L // TKV); the KV axis is the online-softmax
# reduction (size 1 when K/V are fully VMEM-resident).
# ---------------------------------------------------------------------------
def _flash_attn_kernel(x_ref, scale_ref, shift_ref, wq_ref, bq_ref,
                       k_ref, v_ref, wp_ref, bp_ref, o_ref,
                       q_sc, m_sc, l_sc, acc_sc):
    ki = pl.program_id(2)

    @pl.when(ki == 0)
    def _init():
        # fused Q projection: the x tile is already resident for the residual;
        # the attention scale C^-0.5 is pre-folded into wq_ref / bq_ref.
        h = (x_ref[0] * scale_ref[0] + shift_ref[0]).astype(jnp.bfloat16)
        q = jnp.dot(h, wq_ref[...],
                    preferred_element_type=jnp.float32) + bq_ref[...]
        q_sc[...] = q.astype(q_sc.dtype)
        m_sc[...] = jnp.full(m_sc.shape, -jnp.inf, m_sc.dtype)
        l_sc[...] = jnp.zeros(l_sc.shape, l_sc.dtype)
        acc_sc[...] = jnp.zeros(acc_sc.shape, acc_sc.dtype)

    q = q_sc[...]                # (TQ,  C) bf16
    k = k_ref[0]                 # (TKV, C) bf16
    v = v_ref[0]                 # (TKV, C) bf16

    # scores: contract the channel axis of both operands (q @ k^T), f32 acc.
    s = lax.dot_general(q, k, dimension_numbers=(((1,), (1,)), ((), ())),
                        preferred_element_type=jnp.float32)     # (TQ, TKV)

    m_prev = m_sc[...]
    m_new = jnp.maximum(m_prev, jnp.max(s, axis=-1, keepdims=True))   # (TQ, 1)
    alpha = jnp.exp(m_prev - m_new)
    p = jnp.exp(s - m_new)                                            # (TQ, TKV)
    l_sc[...] = alpha * l_sc[...] + jnp.sum(p, axis=-1, keepdims=True)
    acc_sc[...] = alpha * acc_sc[...] + jnp.dot(
        p.astype(jnp.bfloat16), v, preferred_element_type=jnp.float32)  # (TQ, C)
    m_sc[...] = m_new

    @pl.when(ki == pl.num_programs(2) - 1)
    def _finalize():
        # normalize once at the end; reciprocal goes to the (idle) EUP slot.
        h_att = acc_sc[...] * pl.reciprocal(l_sc[...], approx=True)   # (TQ, C)
        out = jnp.dot(h_att.astype(jnp.bfloat16), wp_ref[...],
                      preferred_element_type=jnp.float32) + bp_ref[...]
        o_ref[0] = (x_ref[0] + out).astype(o_ref.dtype)               # residual


# ---------------------------------------------------------------------------
# Wrapper
# ---------------------------------------------------------------------------
def _pick_tile(n, target):
    """Largest t <= target dividing n, preferring multiples of 128, then 8."""
    if n <= target:
        return n
    for step in (128, 8):
        t = (min(target, n) // step) * step
        while t >= step:
            if n % t == 0:
                return t
            t -= step
    # TODO(synk): pad L to a multiple of 128 with masked tails instead of
    # falling back to a single full-L tile for pathological H*W.
    return n


_RESIDENT_KV_BUDGET = 28 * 1024 * 1024   # conservative vs v7x's 64 MiB VMEM


def _stage3_vmem_bytes(tq, tkv, c):
    """Rough VMEM footprint of the attention kernel (double-buffered blocks)."""
    dbl = 2
    blocks = dbl * (tq * c * 4            # x tile (f32)
                    + 2 * c * c * 2       # Wq + Wproj (bf16)
                    + 2 * tkv * c * 2     # K + V tiles (bf16)
                    + tq * c * 4)         # output tile (f32)
    scratch = tq * c * 2 + 2 * tq * 4 + tq * c * 4
    temps = 2 * tq * tkv * 4 + 2 * tq * c * 4
    return blocks + scratch + temps


def attention_block(x, params, *, eps=1e-5, q_tile=512, kv_tile=512,
                    stat_tile=512, resident_kv=None):
    """x: (N, C, H, W) float32 (NCHW, matching the PyTorch module)."""
    N, C, H, W = x.shape
    L = H * W
    G = min(32, C)
    assert C % G == 0, "channels must be divisible by num_groups (PyTorch constraint)"
    Cg = C // G

    f32, bf16 = jnp.float32, jnp.bfloat16

    # token-major layout (N, L, C): lane axis = C (layout plumbing in wrapper).
    # TODO(synk): if the surrounding model can keep (N, L, C)/NHWC end-to-end,
    # drop these two full-HBM-pass transposes.
    x_t = jnp.transpose(x.reshape(N, C, L), (0, 2, 1)).astype(f32)

    gnw = params["gn_weight"].reshape(1, C).astype(f32)
    gnb = params["gn_bias"].reshape(1, C).astype(f32)

    attn_scale = float(C) ** -0.5
    wqkv = params["qkv_weight"].reshape(3 * C, C).astype(f32)
    bqkv = params["qkv_bias"].reshape(3 * C).astype(f32)
    # attention scale folded into the Q projection (weights + bias), bf16 MXU operands.
    wq_t = (wqkv[0:C].T * attn_scale).astype(bf16)                   # (C, C)
    bq = (bqkv[0:C] * attn_scale).reshape(1, C).astype(f32)          # (1, C)
    # K and V projections merged into one (C, 2C) matmul.
    wkv_t = jnp.concatenate([wqkv[C:2 * C].T, wqkv[2 * C:3 * C].T],
                            axis=1).astype(bf16)                      # (C, 2C)
    bkv = jnp.concatenate([bqkv[C:2 * C], bqkv[2 * C:3 * C]]
                          ).reshape(1, 2 * C).astype(f32)             # (1, 2C)

    wp_t = params["proj_weight"].reshape(C, C).T.astype(bf16)
    bp = params["proj_bias"].reshape(1, C).astype(f32)

    # (C, C) group-membership matrix: gmat[i, j] = 1 iff channels i, j share a group.
    gids = np.arange(C) // Cg
    gmat = jnp.asarray((gids[:, None] == gids[None, :]).astype(np.float32))

    TL = _pick_tile(L, stat_tile)
    TQ = _pick_tile(L, q_tile)
    # Prefer fully-VMEM-resident K/V (TKV = L): the K/V index map then never
    # changes across q-tiles, so Mosaic DMAs K/V once per batch instead of
    # once per q-tile (removes the (L/TQ - 1)x redundant HBM reads).
    if resident_kv is None:
        resident_kv = _stage3_vmem_bytes(TQ, L, C) <= _RESIDENT_KV_BUDGET
    TKV = L if resident_kv else _pick_tile(L, kv_tile)

    # safe on v5e/v6e (128 MiB VMEM) and leaves headroom on v7x (64 MiB).
    vmem_limit = 48 * 1024 * 1024

    # ---- stage 1: GroupNorm stats -> per-channel scale/shift ----
    stats_kernel = functools.partial(_gn_stats_kernel,
                                     inv_count=1.0 / float(Cg * L), eps=eps)
    gn_scale, gn_shift = pl.pallas_call(
        stats_kernel,
        out_shape=(jax.ShapeDtypeStruct((N, 1, C), f32),
                   jax.ShapeDtypeStruct((N, 1, C), f32)),
        grid_spec=pltpu.PrefetchScalarGridSpec(
            num_scalar_prefetch=0,
            grid=(N, L // TL),
            in_specs=[
                pl.BlockSpec((1, TL, C), lambda n, l: (n, l, 0)),   # x (token-major)
                pl.BlockSpec((1, C), lambda n, l: (0, 0)),          # gn weight
                pl.BlockSpec((1, C), lambda n, l: (0, 0)),          # gn bias
                pl.BlockSpec((C, C), lambda n, l: (0, 0)),          # group matrix
            ],
            out_specs=(
                pl.BlockSpec((1, 1, C), lambda n, l: (n, 0, 0)),
                pl.BlockSpec((1, 1, C), lambda n, l: (n, 0, 0)),
            ),
            scratch_shapes=[pltpu.VMEM((1, C), f32),                # sum acc
                            pltpu.VMEM((1, C), f32)],               # sumsq acc
        ),
        compiler_params=pltpu.CompilerParams(
            dimension_semantics=("parallel", "arbitrary"),
            vmem_limit_bytes=vmem_limit),
    )(x_t, gnw, gnb, gmat)

    # ---- stage 2: GN affine + merged K/V projection (bf16 outputs) ----
    k, v = pl.pallas_call(
        functools.partial(_kv_proj_kernel, channels=C),
        out_shape=(jax.ShapeDtypeStruct((N, L, C), bf16),
                   jax.ShapeDtypeStruct((N, L, C), bf16)),
        grid_spec=pltpu.PrefetchScalarGridSpec(
            num_scalar_prefetch=0,
            grid=(N, L // TL),
            in_specs=[
                pl.BlockSpec((1, TL, C), lambda n, l: (n, l, 0)),   # x
                pl.BlockSpec((1, 1, C), lambda n, l: (n, 0, 0)),    # gn scale
                pl.BlockSpec((1, 1, C), lambda n, l: (n, 0, 0)),    # gn shift
                pl.BlockSpec((C, 2 * C), lambda n, l: (0, 0)),      # [Wk^T | Wv^T]
                pl.BlockSpec((1, 2 * C), lambda n, l: (0, 0)),      # [bk | bv]
            ],
            out_specs=(
                pl.BlockSpec((1, TL, C), lambda n, l: (n, l, 0)),   # k
                pl.BlockSpec((1, TL, C), lambda n, l: (n, l, 0)),   # v
            ),
        ),
        compiler_params=pltpu.CompilerParams(
            dimension_semantics=("parallel", "parallel"),
            vmem_limit_bytes=vmem_limit),
    )(x_t, gn_scale, gn_shift, wkv_t, bkv)

    # ---- stage 3: fused q proj + flash attention + proj + residual ----
    out_t = pl.pallas_call(
        _flash_attn_kernel,
        out_shape=jax.ShapeDtypeStruct((N, L, C), f32),
        grid_spec=pltpu.PrefetchScalarGridSpec(
            num_scalar_prefetch=0,
            grid=(N, L // TQ, L // TKV),
            in_specs=[
                pl.BlockSpec((1, TQ, C), lambda n, qi, ki: (n, qi, 0)),   # x (q src + residual)
                pl.BlockSpec((1, 1, C), lambda n, qi, ki: (n, 0, 0)),     # gn scale
                pl.BlockSpec((1, 1, C), lambda n, qi, ki: (n, 0, 0)),     # gn shift
                pl.BlockSpec((C, C), lambda n, qi, ki: (0, 0)),           # Wq^T (scale folded)
                pl.BlockSpec((1, C), lambda n, qi, ki: (0, 0)),           # bq (scale folded)
                pl.BlockSpec((1, TKV, C), lambda n, qi, ki: (n, ki, 0)),  # k
                pl.BlockSpec((1, TKV, C), lambda n, qi, ki: (n, ki, 0)),  # v
                pl.BlockSpec((C, C), lambda n, qi, ki: (0, 0)),           # Wproj^T
                pl.BlockSpec((1, C), lambda n, qi, ki: (0, 0)),           # bproj
            ],
            out_specs=pl.BlockSpec((1, TQ, C), lambda n, qi, ki: (n, qi, 0)),
            scratch_shapes=[
                pltpu.VMEM((TQ, C), bf16),   # fused-q tile
                pltpu.VMEM((TQ, 1), f32),    # running max
                pltpu.VMEM((TQ, 1), f32),    # running sum
                pltpu.VMEM((TQ, C), f32),    # output accumulator
            ],
        ),
        compiler_params=pltpu.CompilerParams(
            dimension_semantics=("parallel", "parallel", "arbitrary"),
            vmem_limit_bytes=vmem_limit),
    )(x_t, gn_scale, gn_shift, wq_t, bq, k, v, wp_t, bp)

    return jnp.transpose(out_t, (0, 2, 1)).reshape(N, C, H, W)


# ---------------------------------------------------------------------------
# Pure-JAX reference matching the PyTorch forward exactly (all f32)
# ---------------------------------------------------------------------------
def attention_block_reference(x, params, *, eps=1e-5):
    N, C, H, W = x.shape
    G = min(32, C)
    xg = x.reshape(N, G, C // G, H, W)
    mean = xg.mean(axis=(2, 3, 4), keepdims=True)
    var = ((xg - mean) ** 2).mean(axis=(2, 3, 4), keepdims=True)
    h = ((xg - mean) / jnp.sqrt(var + eps)).reshape(N, C, H, W)
    h = h * params["gn_weight"][None, :, None, None] + params["gn_bias"][None, :, None, None]

    wqkv = params["qkv_weight"].reshape(3 * C, C)
    qkv = jnp.einsum('oc,nchw->nohw', wqkv, h) + params["qkv_bias"][None, :, None, None]
    q, k, v = jnp.split(qkv, 3, axis=1)
    L = H * W
    q = q.reshape(N, C, L).transpose(0, 2, 1)
    k = k.reshape(N, C, L).transpose(0, 2, 1)
    v = v.reshape(N, C, L).transpose(0, 2, 1)
    attn = jnp.einsum('nic,njc->nij', q, k) * (C ** -0.5)
    attn = jax.nn.softmax(attn, axis=-1)
    ho = jnp.einsum('nij,njc->nic', attn, v).transpose(0, 2, 1).reshape(N, C, H, W)
    wproj = params["proj_weight"].reshape(C, C)
    out = jnp.einsum('oc,nchw->nohw', wproj, ho) + params["proj_bias"][None, :, None, None]
    return x + out


def init_params(key, channels):
    C = channels
    ks = jax.random.split(key, 6)
    bound_qkv = 1.0 / math.sqrt(C)   # PyTorch Conv2d default init bounds (fan_in = C*1*1)
    bound_proj = 1.0 / math.sqrt(C)
    return {
        "gn_weight": 1.0 + 0.1 * jax.random.normal(ks[0], (C,), jnp.float32),
        "gn_bias": 0.1 * jax.random.normal(ks[1], (C,), jnp.float32),
        "qkv_weight": jax.random.uniform(ks[2], (3 * C, C, 1, 1), jnp.float32,
                                         -bound_qkv, bound_qkv),
        "qkv_bias": jax.random.uniform(ks[3], (3 * C,), jnp.float32,
                                       -bound_qkv, bound_qkv),
        "proj_weight": jax.random.uniform(ks[4], (C, C, 1, 1), jnp.float32,
                                          -bound_proj, bound_proj),
        "proj_bias": jax.random.uniform(ks[5], (C,), jnp.float32,
                                        -bound_proj, bound_proj),
    }


if __name__ == "__main__":
    N, C, H, W = 2, 4, 16, 16
    key = jax.random.PRNGKey(0)
    kx, kp = jax.random.split(key)
    x = jax.random.normal(kx, (N, C, H, W), jnp.float32)
    params = init_params(kp, C)

    ref = jax.block_until_ready(attention_block_reference(x, params))

    # Path 1: auto tile selection -> VMEM-resident K/V (single KV grid step).
    out_res = attention_block(x, params, q_tile=128, stat_tile=128)
    out_res = jax.block_until_ready(out_res)
    np.testing.assert_allclose(np.asarray(out_res), np.asarray(ref),
                               rtol=2e-2, atol=2e-2)

    # Path 2: forced tiled-KV fallback -> multi-step online softmax
    # (2 q-tiles x 2 kv-tiles, multi-step GroupNorm reduction).
    out_tiled = attention_block(x, params, q_tile=128, kv_tile=128,
                                stat_tile=128, resident_kv=False)
    out_tiled = jax.block_until_ready(out_tiled)
    np.testing.assert_allclose(np.asarray(out_tiled), np.asarray(ref),
                               rtol=2e-2, atol=2e-2)

    print("KERNEL_OK")
</pallas_src>

<mosaic_0001>
module attributes {stable_mosaic.version = 11 : i64} {
  func.func @_gn_stats_kernel(%arg0: i32, %arg1: i32, %arg2: memref<1x128x4xf32, #tpu.memory_space<vmem>>, %arg3: memref<1x4xf32, #tpu.memory_space<vmem>>, %arg4: memref<1x4xf32, #tpu.memory_space<vmem>>, %arg5: memref<4x4xf32, #tpu.memory_space<vmem>>, %arg6: memref<1x1x4xf32, #tpu.memory_space<vmem>>, %arg7: memref<1x1x4xf32, #tpu.memory_space<vmem>>, %arg8: memref<1x4xf32, #tpu.memory_space<vmem>>, %arg9: memref<1x4xf32, #tpu.memory_space<vmem>>) attributes {dimension_semantics = [#tpu.dimension_semantics<parallel>, #tpu.dimension_semantics<arbitrary>], iteration_bounds = array<i64: 2, 2>, scalar_prefetch = 0 : i64, scratch_operands = 2 : i64, tpu.core_type = #tpu.core_type<tc>, window_params = [{transform_indices = @transform_0, window_bounds = array<i64: 1, 128, 4>}, {pipeline_mode = #tpu.pipeline_mode<synchronous>, transform_indices = @transform_1, window_bounds = array<i64: 1, 4>}, {pipeline_mode = #tpu.pipeline_mode<synchronous>, transform_indices = @transform_2, window_bounds = array<i64: 1, 4>}, {pipeline_mode = #tpu.pipeline_mode<synchronous>, transform_indices = @transform_3, window_bounds = array<i64: 4, 4>}, {transform_indices = @transform_4, window_bounds = array<i64: 1, 1, 4>}, {transform_indices = @transform_5, window_bounds = array<i64: 1, 1, 4>}]} {
    %c0_i32 = arith.constant 0 : i32
    %0 = arith.cmpi eq, %arg1, %c0_i32 : i32
    %1 = arith.extui %0 : i1 to i32
    %c0_i32_0 = arith.constant 0 : i32
    %2 = arith.cmpi ne, %1, %c0_i32_0 : i32
    scf.if %2 {
      %cst_13 = arith.constant 0.000000e+00 : f32
      %19 = vector.broadcast %cst_13 : f32 to vector<1x4xf32>
      %c0_14 = arith.constant 0 : index
      %c0_15 = arith.constant 0 : index
      %20 = vector.load %arg8[%c0_14, %c0_15] : memref<1x4xf32, #tpu.memory_space<vmem>>, vector<1x4xf32>
      tpu.vector_store %arg8[%c0_14, %c0_15], %19 {strides = array<i32>} : memref<1x4xf32, #tpu.memory_space<vmem>>, vector<1x4xf32>,
      %cst_16 = arith.constant 0.000000e+00 : f32
      %21 = vector.broadcast %cst_16 : f32 to vector<1x4xf32>
      %c0_17 = arith.constant 0 : index
      %c0_18 = arith.constant 0 : index
      %22 = vector.load %arg9[%c0_17, %c0_18] : memref<1x4xf32, #tpu.memory_space<vmem>>, vector<1x4xf32>
      tpu.vector_store %arg9[%c0_17, %c0_18], %21 {strides = array<i32>} : memref<1x4xf32, #tpu.memory_space<vmem>>, vector<1x4xf32>,
    } else {
    }
    %c0 = arith.constant 0 : index
    %c0_1 = arith.constant 0 : index
    %c0_2 = arith.constant 0 : index
    %3 = vector.load %arg2[%c0, %c0_1, %c0_2] : memref<1x128x4xf32, #tpu.memory_space<vmem>>, vector<1x128x4xf32>
    %4 = vector.shape_cast %3 : vector<1x128x4xf32> to vector<128x4xf32>
    %c0_3 = arith.constant 0 : index
    %c0_4 = arith.constant 0 : index
    %5 = vector.load %arg8[%c0_3, %c0_4] : memref<1x4xf32, #tpu.memory_space<vmem>>, vector<1x4xf32>
    %cst = arith.constant dense<0.000000e+00> : vector<4xf32>
    %6 = vector.multi_reduction <add>, %4, %cst [0] : vector<128x4xf32> to vector<4xf32>
    %7 = vector.shape_cast %6 : vector<4xf32> to vector<1x4xf32>
    %8 = arith.addf %5, %7 : vector<1x4xf32>
    %c0_5 = arith.constant 0 : index
    %c0_6 = arith.constant 0 : index
    %9 = vector.load %arg8[%c0_5, %c0_6] : memref<1x4xf32, #tpu.memory_space<vmem>>, vector<1x4xf32>
    tpu.vector_store %arg8[%c0_5, %c0_6], %8 {strides = array<i32>} : memref<1x4xf32, #tpu.memory_space<vmem>>, vector<1x4xf32>,
    %c0_7 = arith.constant 0 : index
    %c0_8 = arith.constant 0 : index
    %10 = vector.load %arg9[%c0_7, %c0_8] : memref<1x4xf32, #tpu.memory_space<vmem>>, vector<1x4xf32>
    %11 = arith.mulf %4, %4 : vector<128x4xf32>
    %cst_9 = arith.constant dense<0.000000e+00> : vector<4xf32>
    %12 = vector.multi_reduction <add>, %11, %cst_9 [0] : vector<128x4xf32> to vector<4xf32>
    %13 = vector.shape_cast %12 : vector<4xf32> to vector<1x4xf32>
    %14 = arith.addf %10, %13 : vector<1x4xf32>
    %c0_10 = arith.constant 0 : index
    %c0_11 = arith.constant 0 : index
    %15 = vector.load %arg9[%c0_10, %c0_11] : memref<1x4xf32, #tpu.memory_space<vmem>>, vector<1x4xf32>
    tpu.vector_store %arg9[%c0_10, %c0_11], %14 {strides = array<i32>} : memref<1x4xf32, #tpu.memory_space<vmem>>, vector<1x4xf32>,
    %c1_i32 = arith.constant 1 : i32
    %16 = arith.cmpi eq, %arg1, %c1_i32 : i32
    %17 = arith.extui %16 : i1 to i32
    %c0_i32_12 = arith.constant 0 : i32
    %18 = arith.cmpi ne, %17, %c0_i32_12 : i32
    scf.if %18 {
      %c0_13 = arith.constant 0 : index
      %c0_14 = arith.constant 0 : index
      %19 = vector.load %arg8[%c0_13, %c0_14] : memref<1x4xf32, #tpu.memory_space<vmem>>, vector<1x4xf32>
      %c0_15 = arith.constant 0 : index
      %c0_16 = arith.constant 0 : index
      %20 = vector.load %arg5[%c0_15, %c0_16] : memref<4x4xf32, #tpu.memory_space<vmem>>, vector<4x4xf32>
      %cst_17 = arith.constant dense<0.000000e+00> : vector<1x4xf32>
      %21 = tpu.matmul %19, %20, %cst_17 {dimension_numbers = #tpu.dot_dimension_numbers<[1], [0], [0], [1], [0, 0, 1, 1], [], []>} : vector<1x4xf32>, vector<4x4xf32>, vector<1x4xf32> -> vector<1x4xf32>
      %c0_18 = arith.constant 0 : index
      %c0_19 = arith.constant 0 : index
      %22 = vector.load %arg9[%c0_18, %c0_19] : memref<1x4xf32, #tpu.memory_space<vmem>>, vector<1x4xf32>
      %c0_20 = arith.constant 0 : index
      %c0_21 = arith.constant 0 : index
      %23 = vector.load %arg5[%c0_20, %c0_21] : memref<4x4xf32, #tpu.memory_space<vmem>>, vector<4x4xf32>
      %cst_22 = arith.constant dense<0.000000e+00> : vector<1x4xf32>
      %24 = tpu.matmul %22, %23, %cst_22 {dimension_numbers = #tpu.dot_dimension_numbers<[1], [0], [0], [1], [0, 0, 1, 1], [], []>} : vector<1x4xf32>, vector<4x4xf32>, vector<1x4xf32> -> vector<1x4xf32>
      %cst_23 = arith.constant 3.906250e-03 : f32
      %25 = vector.broadcast %cst_23 : f32 to vector<1x4xf32>
      %26 = arith.mulf %21, %25 : vector<1x4xf32>
      %cst_24 = arith.constant 3.906250e-03 : f32
      %27 = vector.broadcast %cst_24 : f32 to vector<1x4xf32>
      %28 = arith.mulf %24, %27 : vector<1x4xf32>
      %29 = arith.mulf %26, %26 : vector<1x4xf32>
      %30 = arith.subf %28, %29 : vector<1x4xf32>
      %cst_25 = arith.constant 0.000000e+00 : f32
      %31 = vector.broadcast %cst_25 : f32 to vector<1x4xf32>
      %32 = arith.maximumf %30, %31 : vector<1x4xf32>
      %cst_26 = arith.constant 9.99999974E-6 : f32
      %33 = vector.broadcast %cst_26 : f32 to vector<1x4xf32>
      %34 = arith.addf %32, %33 : vector<1x4xf32>
      %35 = math.rsqrt %34 : vector<1x4xf32>
      %c0_27 = arith.constant 0 : index
      %c0_28 = arith.constant 0 : index
      %36 = vector.load %arg3[%c0_27, %c0_28] : memref<1x4xf32, #tpu.memory_space<vmem>>, vector<1x4xf32>
      %37 = arith.mulf %36, %35 : vector<1x4xf32>
      %c0_29 = arith.constant 0 : index
      %c0_30 = arith.constant 0 : index
      %c0_31 = arith.constant 0 : index
      %38 = vector.load %arg6[%c0_29, %c0_30, %c0_31] : memref<1x1x4xf32, #tpu.memory_space<vmem>>, vector<1x1x4xf32>
      %39 = vector.shape_cast %38 : vector<1x1x4xf32> to vector<1x4xf32>
      %40 = vector.shape_cast %37 : vector<1x4xf32> to vector<1x1x4xf32>
      tpu.vector_store %arg6[%c0_29, %c0_30, %c0_31], %40 {strides = array<i32>} : memref<1x1x4xf32, #tpu.memory_space<vmem>>, vector<1x1x4xf32>,
      %c0_32 = arith.constant 0 : index
      %c0_33 = arith.constant 0 : index
      %41 = vector.load %arg4[%c0_32, %c0_33] : memref<1x4xf32, #tpu.memory_space<vmem>>, vector<1x4xf32>
      %42 = arith.mulf %26, %37 : vector<1x4xf32>
      %43 = arith.subf %41, %42 : vector<1x4xf32>
      %c0_34 = arith.constant 0 : index
      %c0_35 = arith.constant 0 : index
      %c0_36 = arith.constant 0 : index
      %44 = vector.load %arg7[%c0_34, %c0_35, %c0_36] : memref<1x1x4xf32, #tpu.memory_space<vmem>>, vector<1x1x4xf32>
      %45 = vector.shape_cast %44 : vector<1x1x4xf32> to vector<1x4xf32>
      %46 = vector.shape_cast %43 : vector<1x4xf32> to vector<1x1x4xf32>
      tpu.vector_store %arg7[%c0_34, %c0_35, %c0_36], %46 {strides = array<i32>} : memref<1x1x4xf32, #tpu.memory_space<vmem>>, vector<1x1x4xf32>,
    } else {
    }
    return
  }
  func.func @transform_0(%arg0: i32, %arg1: i32) -> (i32, i32, i32) {
    %c0_i32 = arith.constant 0 : i32
    %c0_i32_0 = arith.constant 0 : i32
    return %arg0, %arg1, %c0_i32 : i32, i32, i32
  }
  func.func @transform_1(%arg0: i32, %arg1: i32) -> (i32, i32) {
    %c0_i32 = arith.constant 0 : i32
    %c0_i32_0 = arith.constant 0 : i32
    %c0_i32_1 = arith.constant 0 : i32
    return %c0_i32, %c0_i32_0 : i32, i32
  }
  func.func @transform_2(%arg0: i32, %arg1: i32) -> (i32, i32) {
    %c0_i32 = arith.constant 0 : i32
    %c0_i32_0 = arith.constant 0 : i32
    %c0_i32_1 = arith.constant 0 : i32
    return %c0_i32, %c0_i32_0 : i32, i32
  }
  func.func @transform_3(%arg0: i32, %arg1: i32) -> (i32, i32) {
    %c0_i32 = arith.constant 0 : i32
    %c0_i32_0 = arith.constant 0 : i32
    %c0_i32_1 = arith.constant 0 : i32
    return %c0_i32, %c0_i32_0 : i32, i32
  }
  func.func @transform_4(%arg0: i32, %arg1: i32) -> (i32, i32, i32) {
    %c0_i32 = arith.constant 0 : i32
    %c0_i32_0 = arith.constant 0 : i32
    %c0_i32_1 = arith.constant 0 : i32
    return %arg0, %c0_i32, %c0_i32_0 : i32, i32, i32
  }
  func.func @transform_5(%arg0: i32, %arg1: i32) -> (i32, i32, i32) {
    %c0_i32 = arith.constant 0 : i32
    %c0_i32_0 = arith.constant 0 : i32
    %c0_i32_1 = arith.constant 0 : i32
    return %arg0, %c0_i32, %c0_i32_0 : i32, i32, i32
  }
}

</mosaic_0001>

<bundles_post_ra>
// kernel: tpu_custom_call.1
= control target key start
LH: loop header
LB: loop body
LE: loop exit
PB: predicated region body
PF: predicated region fallthrough
CT: control target
= control target key end

     0   :  { %s1192_s0 = inlined_call_operand.vmem [shape: f32[2,256,4], index: 0, kind: input, shape index: {}]   ;;  %s1193_s1 = inlined_call_operand.vmem [shape: f32[1,4], index: 1, kind: input, shape index: {}]   ;;  %s1194_s2 = inlined_call_operand.vmem [shape: f32[1,4], index: 2, kind: input, shape index: {}]   ;;  %s1195_s3 = inlined_call_operand.vmem [shape: f32[4,4], index: 3, kind: input, shape index: {}]   ;;  %s1196_s4 = inlined_call_operand.hbm [shape: f32[2,1,4], index: 4, kind: output, shape index: {0}]   ;;  %s1197_s5 = inlined_call_operand.hbm [shape: f32[2,1,4], index: 5, kind: output, shape index: {1}]  }
   0x1   :  { %1199 = sst [smem:[#allocation10_spill]] %s1192_s0 }
   0x2   :  { %1200 = sst [smem:[#allocation11_spill]] %s1193_s1 }
   0x3   :  { %11 = vsyncpa [#allocation5], 0 }
   0x4   :  { %13 = vsyncpa [#allocation5 + $0x1], 0 }
   0x5   :  { %14 = vsyncpa [#allocation7], 0 }
   0x6   :  { %16 = vsyncpa [#allocation7 + $0x1], 0  ;;  %s958_s18 = smov 0   ;;  %s960_s19 = smov 0  }
   0x7   :  { %s962_s20 = smov 0   ;;  %s964_s21 = smov 0  }
   0x8   :  { %s966_s22 = smov 0   ;;  %s968_s23 = smov 0  }
   0x9   :  { %s970_s24 = smov 0   ;;  %s972_s25 = smov 0  }
   0xa LB: > { %s682_s26 = sadd.s32 4294967295, %s921_s25   ;;  %s683_s27 = sadd.s32 4294967294, %s921_s25   ;;  %s921_s25 = sphi %s972_s25, %s22_s25   ;;  %s917_s24 = sphi %s970_s24, %s1212_s24   ;;  %s913_s23 = sphi %s968_s23, %s1211_s23   ;;  %s909_s22 = sphi %s966_s22, %s1210_s22   ;;  %s905_s21 = sphi %s964_s21, %s1209_s21   ;;  %s901_s20 = sphi %s962_s20, %s1208_s20   ;;  %s897_s19 = sphi %s960_s19, %s1207_s19   ;;  %s893_s18 = sphi %s958_s18, %s1206_s18  }
   0xb   : > { %s31_s28 = sadd.s32 1, %s913_s23  ;;  %s34_s29 = sadd.s32 1, %s917_s24 }
   0xc   : > { %p32_p0 = scmp.ge.s32.totalorder %s31_s28, 2  ;;  %p142_p1 = scmp.ne.s32.totalorder %s901_s20, %s897_s19 }
   0xd   : > { %p143_p2 = scmp.eq.s32.totalorder %s682_s26, 3  ;;  %p148_p4 = scmp.ne.s32.totalorder %s897_s19, %s893_s18 }
   0xe   : > { %s1214_s28 = smov (%p32_p0, %s31_s28), 0  ;;  %s1216_s29 = smov (!%p32_p0, %s34_s29), %s917_s24 }
   0xf   : > { %p1007_p3 = por %p143_p2, %p142_p1  ;;  %p36_p5 = scmp.ge.s32.totalorder %s1216_s29, 2 }
  0x10   : > { %p149_p6 = scmp.eq.s32.totalorder %s683_s27, 3  ;;  %p686_p7 = scmp.ge.s32.totalorder %s921_s25, 1 }
  0x11   : > { %p215_p8 = scmp.lt.s32.totalorder %s921_s25, 5  ;;  %s1218_s29 = smov (%p36_p5, %s1216_s29), 0 }
  0x12   : > { %p1017_p9 = por %p149_p6, %p148_p4  ;;  %s129_s7 = ssub.s32 %s917_s24, %s1218_s29 }
  0x13   : > { %p216_p10 = pnand %p686_p7, %p215_p8  ;;  %s132_s8 = sadd.s32 1, %s901_s20 }
  0x14   : > { %p130_p11 = scmp.eq.s32.totalorder %s129_s7, 0  ;;  %s1028_s10 = sand.u32 (!%p216_p10), 1, %s897_s19  }
  0x15   : > { %219 = sbr.rel (%p216_p10) target bundleno = 379 (0x17b), region = 36  ;;  %s687_s11 = sshll.u32 (!%p216_p10), %s905_s21, 4 }
  0x16   : > { %s1025_s9 = scalar_select %p130_p11, %s901_s20, %s132_s8  }
  0x17   : > { %p251_p12 = scmp.lt.s32.totalorder (!%p216_p10), %s909_s22, 1  ;;  %p253_p13 = scmp.lt.s32.totalorder (!%p216_p10), %s687_s11, 31 }
  0x18   : > { %s1203_s0 = sld [smem:[#allocation10_spill]] (!%p216_p10)  ;;  %s243_s27 = scalar_lea.vmem (!%p216_p10), [#allocation4], %s1028_s10 }
  0x19   : > { %s1198_s7 = scalar_lea.vmem (!%p216_p10), [#allocation6], %s1028_s10  ;;  %p690_p0 = scmp.ne.s32.totalorder (!%p216_p10), %s905_s21, 0 }
  0x1c   : > { %s252_s12 = scalar_select %p251_p12, %s909_s22, 1 }
  0x1d   : > { %s1220_s11 = smov (!%p253_p13, %s687_s11), 31  ;;  %263 = sbr.rel (%p690_p0) target bundleno = 36 (0x24), region = 40 }
  0x1e   : > { %s688_s13 = sshll.u32 %s252_s12, 5  ;;  %vm264_vm0 = vcmask (!%p690_p0), 24576   ;;  %v923_v0 = vmov (!%p690_p0), 0.0  }
  0x1f   : > { %s256_s14 = sadd.s32 %s688_s13, %s1220_s11  ;;  %265 = vst.msk [vmem:[#allocation2] sm:$0x1] (!%p690_p0), %vm264_vm0, %v923_v0  ;;  %266 = vst.msk [vmem:[#allocation3] sm:$0x1] (!%p690_p0), %vm264_vm0, %v923_v0 }
  0x20   : > { %s689_s15 = sshll.u32 %s256_s14, 3 }
  0x21   : > { %s1036_s26 = scalar_lea.vmem %s1203_s0, %s689_s15 }
  0x24 PF: > { %v267_v1 = vld [vmem:[%s1036_s26] sm:$0xff]  ;;  %v268_v2 = vld [vmem:[%s1036_s26 + $0x8] sm:$0xff]  ;;  %v269_v3 = vld [vmem:[%s1036_s26 + $0x10] sm:$0xff]  ;;  %vm284_vm1 = vcmask 31744   ;;  %vm323_vm2 = vcmask 24576   ;;  %p691_p1 = scmp.ne.s32.totalorder %s905_s21, 1 }
  0x25   : > { %v285_v4 = vsel %vm284_vm1, %v267_v1, 0.0  ;;  %v286_v5 = vsel %vm284_vm1, %v268_v2, 0.0  ;;  %v288_v6 = vsel %vm284_vm1, %v269_v3, 0.0  ;;  %v270_v7 = vld [vmem:[%s1036_s26 + $0x18] sm:$0xff]  ;;  %v271_v10 = vld [vmem:[%s1036_s26 + $0x20] sm:$0xff]  ;;  %v272_v13 = vld [vmem:[%s1036_s26 + $0x28] sm:$0xff]  ;;  %v326_v15 = vmul.f32 %v267_v1, %v267_v1 }
  0x26   : > { %v287_v8 = vadd.f32 %v286_v5, %v285_v4  ;;  %v290_v9 = vsel %vm284_vm1, %v270_v7, 0.0  ;;  %v292_v12 = vsel %vm284_vm1, %v271_v10, 0.0  ;;  %v327_v16 = vmul.f32 %v268_v2, %v268_v2  ;;  %v273_v19 = vld [vmem:[%s1036_s26 + $0x30] sm:$0xff]  ;;  %v274_v24 = vld [vmem:[%s1036_s26 + $0x38] sm:$0xff]  ;;  %v275_v31 = vld [vmem:[%s1036_s26 + $0x40] sm:$0xff]  ;;  %s1204_s1 = sld [smem:[#allocation11_spill]] (!%p691_p1) }
  0x27   : > { %v328_v17 = vmul.f32 %v269_v3, %v269_v3  ;;  %v294_v18 = vsel %vm284_vm1, %v272_v13, 0.0  ;;  %v329_v21 = vmul.f32 %v270_v7, %v270_v7  ;;  %v296_v22 = vsel %vm284_vm1, %v273_v19, 0.0  ;;  %v276_v37 = vld [vmem:[%s1036_s26 + $0x48] sm:$0xff]  ;;  %v277_v43 = vld [vmem:[%s1036_s26 + $0x50] sm:$0xff]  ;;  %v278_v49 = vld [vmem:[%s1036_s26 + $0x58] sm:$0xff] }
  0x28   : > { %v289_v11 = vadd.f32 %v288_v6, %v287_v8  ;;  %v330_v23 = vmul.f32 %v271_v10, %v271_v10  ;;  %v342_v26 = vsel %vm284_vm1, %v326_v15, 0.0  ;;  %v343_v27 = vsel %vm284_vm1, %v327_v16, 0.0  ;;  %v279_v55 = vld [vmem:[%s1036_s26 + $0x60] sm:$0xff]  ;;  %v280_v61 = vld [vmem:[%s1036_s26 + $0x68] sm:$0xff]  ;;  %v281_v3 = vld [vmem:[%s1036_s26 + $0x70] sm:$0xff] }
  0x29   : > { %v345_v28 = vsel %vm284_vm1, %v328_v17, 0.0  ;;  %v298_v29 = vsel %vm284_vm1, %v274_v24, 0.0  ;;  %v344_v30 = vadd.f32 %v343_v27, %v342_v26  ;;  %v331_v33 = vmul.f32 %v272_v13, %v272_v13 }
  0x2a   : > { %v291_v14 = vadd.f32 %v290_v9, %v289_v11  ;;  %v347_v34 = vsel %vm284_vm1, %v329_v21, 0.0  ;;  %v300_v35 = vsel %vm284_vm1, %v275_v31, 0.0  ;;  %v332_v39 = vmul.f32 %v273_v19, %v273_v19  ;;  %v282_v9 = vld [vmem:[%s1036_s26 + $0x78] sm:$0xff] }
  0x2b   : > { %v346_v36 = vadd.f32 %v345_v28, %v344_v30  ;;  %v349_v40 = vsel %vm284_vm1, %v330_v23, 0.0  ;;  %v302_v41 = vsel %vm284_vm1, %v276_v37, 0.0  ;;  %v333_v45 = vmul.f32 %v274_v24, %v274_v24 }
  0x2c   : > { %v293_v20 = vadd.f32 %v292_v12, %v291_v14  ;;  %v351_v46 = vsel %vm284_vm1, %v331_v33, 0.0  ;;  %v304_v47 = vsel %vm284_vm1, %v277_v43, 0.0  ;;  %v334_v51 = vmul.f32 %v275_v31, %v275_v31 }
  0x2d   : > { %v348_v42 = vadd.f32 %v347_v34, %v346_v36  ;;  %v353_v52 = vsel %vm284_vm1, %v332_v39, 0.0  ;;  %v306_v53 = vsel %vm284_vm1, %v278_v49, 0.0  ;;  %v335_v57 = vmul.f32 %v276_v37, %v276_v37  ;;  %v283_v36 = vld [vmem:[#allocation2] sm:$0x1] }
  0x2e   : > { %v295_v25 = vadd.f32 %v294_v18, %v293_v20  ;;  %v355_v58 = vsel %vm284_vm1, %v333_v45, 0.0  ;;  %v308_v59 = vsel %vm284_vm1, %v279_v55, 0.0  ;;  %v336_v63 = vmul.f32 %v277_v43, %v277_v43 }
  0x2f   : > { %v350_v48 = vadd.f32 %v349_v40, %v348_v42  ;;  %v357_v0 = vsel %vm284_vm1, %v334_v51, 0.0  ;;  %v310_v1 = vsel %vm284_vm1, %v280_v61, 0.0  ;;  %v337_v5 = vmul.f32 %v278_v49, %v278_v49 }
  0x30   : > { %v297_v32 = vadd.f32 %v296_v22, %v295_v25  ;;  %v359_v6 = vsel %vm284_vm1, %v335_v57, 0.0  ;;  %v312_v7 = vsel %vm284_vm1, %v281_v3, 0.0  ;;  %v338_v11 = vmul.f32 %v279_v55, %v279_v55 }
  0x31   : > { %v352_v54 = vadd.f32 %v351_v46, %v350_v48  ;;  %v361_v12 = vsel %vm284_vm1, %v336_v63, 0.0  ;;  %v314_v13 = vsel %vm284_vm1, %v282_v9, 0.0  ;;  %v339_v16 = vmul.f32 %v280_v61, %v280_v61  ;;  %v545_v61 = vld [vmem:[%s1204_s1] sm:$0x1] (!%p691_p1) }
  0x32   : > { %v299_v38 = vadd.f32 %v298_v29, %v297_v32  ;;  %v363_v17 = vsel %vm284_vm1, %v337_v5, 0.0  ;;  %v340_v20 = vmul.f32 %v281_v3, %v281_v3  ;;  %v365_v21 = vsel %vm284_vm1, %v338_v11, 0.0 }
  0x33   : > { %v354_v60 = vadd.f32 %v353_v52, %v352_v54  ;;  %v341_v24 = vmul.f32 %v282_v9, %v282_v9  ;;  %v367_v25 = vsel %vm284_vm1, %v339_v16, 0.0  ;;  %vm390_vm3 = vcmask (!%p691_p1), 1043456  }
  0x34   : > { %v301_v44 = vadd.f32 %v300_v35, %v299_v38  ;;  %v369_v28 = vsel %vm284_vm1, %v340_v20, 0.0  ;;  %v924_v48 = vmov (!%p691_p1), 0.0   ;;  %vm925_vm4 = vmmov (!%p691_p1), 0  }
  0x35   : > { %v356_v2 = vadd.f32 %v355_v58, %v354_v60  ;;  %v371_v31 = vsel %vm284_vm1, %v341_v24, 0.0  ;;  %704 = vmatprep.subr.mxu0 (!%p691_p1), %v924_v48  ;;  %706 = vmatprep.mubr.msk.f32.mxu0 (!%p691_p1), %vm925_vm4, %v924_v48 }
  0x36   : > { %v303_v50 = vadd.f32 %v302_v41, %v301_v44  ;;  %v325_v44 = vld [vmem:[#allocation3] sm:$0x1]  ;;  %709 = vmatprep.subr.mxu1 (!%p691_p1), %v924_v48  ;;  %711 = vmatprep.mubr.msk.f32.mxu1 (!%p691_p1), %vm925_vm4, %v924_v48 }
  0x37   : > { %v358_v8 = vadd.f32 %v357_v0, %v356_v2  ;;  %v548_v0 = vld [vmem:[%s1194_s2] sm:$0x1] (!%p691_p1) }
  0x38   : > { %v305_v56 = vadd.f32 %v304_v47, %v303_v50  ;;  %v386_v47 = vld [vmem:[%s1195_s3] sm:$0xf] (!%p691_p1) }
  0x39   : > { %v360_v14 = vadd.f32 %v359_v6, %v358_v8  ;;  %705 = vmatpush3.msk.msra.mxu0 (!%p691_p1), %vm390_vm3, %v386_v47  ;;  %710 = vmatpush3.msk.msra.mxu1 (!%p691_p1), %vm390_vm3, %v386_v47 }
  0x3a   : > { %v307_v62 = vadd.f32 %v306_v53, %v305_v56 }
  0x3b   : > { %v362_v18 = vadd.f32 %v361_v12, %v360_v14 }
  0x3c   : > { %v309_v4 = vadd.f32 %v308_v59, %v307_v62 }
  0x3d   : > { %v364_v22 = vadd.f32 %v363_v17, %v362_v18 }
  0x3e   : > { %v311_v10 = vadd.f32 %v310_v1, %v309_v4 }
  0x3f   : > { %v366_v26 = vadd.f32 %v365_v21, %v364_v22 }
  0x40   : > { %v313_v15 = vadd.f32 %v312_v7, %v311_v10 }
  0x41   : > { %v368_v29 = vadd.f32 %v367_v25, %v366_v26 }
  0x42   : > { %v315_v19 = vadd.f32 %v314_v13, %v313_v15 }
  0x43   : > { %v370_v32 = vadd.f32 %v369_v28, %v368_v29 }
  0x44   : > { %v316_v23 = vrot.slane %v315_v19, 4 }
  0x45   : > { %v372_v34 = vadd.f32 %v371_v31, %v370_v32 }
  0x46   : > { %v317_v27 = vadd.f32 %v316_v23, %v315_v19 }
  0x47   : > { %v373_v37 = vrot.slane %v372_v34, 4 }
  0x48   : > { %v318_v30 = vrot.slane %v317_v27, 2 }
  0x49   : > { %v374_v39 = vadd.f32 %v373_v37, %v372_v34 }
  0x4a   : > { %v319_v33 = vadd.f32 %v318_v30, %v317_v27 }
  0x4b   : > { %v375_v41 = vrot.slane %v374_v39, 2 }
  0x4c   : > { %v320_v35 = vrot.slane %v319_v33, 1 }
  0x4d   : > { %v376_v42 = vadd.f32 %v375_v41, %v374_v39 }
  0x4e   : > { %v321_v38 = vadd.f32 %v320_v35, %v319_v33 }
  0x4f   : > { %v377_v43 = vrot.slane %v376_v42, 1  ;;  %384 = sbr.rel (%p691_p1) target bundleno = 331 (0x14b), region = 44 }
  0x50   : > { %v322_v40 = vadd.f32 %v321_v38, %v283_v36 }
  0x51   : > { %v378_v45 = vadd.f32 %v377_v43, %v376_v42 }
  0x52   : > { %324 = vst.msk [vmem:[#allocation2] sm:$0x1] %vm323_vm2, %v322_v40 }
  0x53   : > { %v379_v46 = vadd.f32 %v378_v45, %v325_v44 }
  0x55   : > { %380 = vst.msk [vmem:[#allocation3] sm:$0x1] %vm323_vm2, %v379_v46 }
  0x59   : > { %v385_v49 = vld [vmem:[#allocation2] sm:$0x1] }
  0x5a   : > { %707 = vmatmul.mubr.msk.f32.vlgmr.msra.gmra.mrb[0].mxu0 %vm284_vm1, %v385_v49 }
  0x5c   : > { %v464_v50 = vld [vmem:[#allocation3] sm:$0x1] }
  0x5d   : > { %712 = vmatmul.mubr.msk.f32.vlgmr.msra.gmra.mrb[0].mxu1 %vm284_vm1, %v464_v50 }
 0x12d   : > { %v460_v51 = vpop.f32.mrb[0].mxu0 }
 0x12e   : > { %v538_v52 = vmul.f32 0.00390625, %v460_v51  ;;  %v708_v53 = vpop.f32.mrb[1].mxu0 }
 0x130   : > { %v534_v54 = vpop.f32.mrb[0].mxu1  ;;  %v540_v55 = vmul.f32 %v538_v52, %v538_v52 }
 0x131   : > { %v539_v56 = vmul.f32 0.00390625, %v534_v54  ;;  %v713_v57 = vpop.f32.mrb[1].mxu1 }
 0x133   : > { %v541_v58 = vsub.f32 %v539_v56, %v540_v55 }
 0x135   : > { %v542_v59 = vmax.f32 %v541_v58, 0.0 }
 0x137   : > { %v543_v60 = vadd.f32 1e-05, %v542_v59 }
 0x139   : > { %793 = vrsqrt.f32 %v543_v60 }
 0x143   : > { %v794_v62 = vpop.eup %793 }
 0x144   : > { %v546_v63 = vmul.f32 %v794_v62, %v545_v61 }
 0x146   : > { %547 = vst.msk [vmem:[%s243_s27] sm:$0x1] %vm323_vm2, %v546_v63  ;;  %v549_v1 = vmul.f32 %v546_v63, %v538_v52 }
 0x148   : > { %v550_v2 = vsub.f32 %v548_v0, %v549_v1 }
 0x14a   : > { %551 = vst.msk [vmem:[%s1198_s7] sm:$0x1] %vm323_vm2, %v550_v2 }
 0x14b PF: > { %s696_s15 = sshll.u32 %s909_s22, 4  ;;  %s569_s8 = sshll.u32 %s243_s27, 4  ;;  %s570_s8 = int_to_ptr.vmem [resolvable:$true] %s569_s8 }
 0x14c   : > { %s1115_s26 = scalar_lea.hbm %s1196_s4, %s696_s15  ;;  %s553_s11 = scalar_lea.sflag [#allocation5], %s1028_s10 }
 0x14d   : > { %s795_s21 = scalar_lea.vmem %s570_s8, 16  ;;  %s926_s12 = smov [#allocation4]  }
 0x14e   : > { %p796_p2 = scmp.ne.s32.totalorder %s570_s8, %s795_s21  ;;  %s799_s13 = sshll.u32 %s926_s12, 4  ;;  %s800_s13 = int_to_ptr.vmem [resolvable:$false] %s799_s13 }
 0x14f   : > { %s801_s14 = scalar_lea.vmem %s800_s13, 32  ;;  %p802_p6 = scmp.lt.s32.totalorder %s570_s8, %s800_s13 }
 0x150   : > { %p797_p4 = pnand %p796_p2, %p1007_p3  ;;  %p803_p7 = scmp.lt.s32.totalorder %s801_s14, %s795_s21 }
 0x152   : > { %p798_p5 = pneg %p797_p4  ;;  %p804_p8 = por %p803_p7, %p802_p6 }
 0x154   : > { %p805_p10 = pnand %p804_p8, %p798_p5 }
 0x156   : > { %808 = shalt.err (!%p805_p10)
}
 0x157   : > { %s809_s27 = scalar_lea.hbm %s1115_s26, 16  ;;  %s813_s12 = scalar_lea.hbm %s1196_s4, 32 }
 0x158   : > { %p810_p11 = scmp.ne.s32.totalorder %s1115_s26, %s809_s27  ;;  %p814_p0 = scmp.lt.u32.totalorder %s1115_s26, %s1196_s4 }
 0x159   : > { %p815_p1 = scmp.lt.u32.totalorder %s813_s12, %s809_s27  ;;  %p817_p4 = scmp.lt.u32.totalorder %s809_s27, %s1115_s26 }
 0x15a   : > { %p811_p12 = pnand %p810_p11, %p1007_p3 }
 0x15b   : > { %p816_p2 = por %p815_p1, %p814_p0 }
 0x15c   : > { %p812_p13 = pneg %p811_p12 }
 0x15d   : > { %p818_p5 = por %p817_p4, %p816_p2 }
 0x15f   : > { %p819_p6 = pnand %p818_p5, %p812_p13 }
 0x161   : > { %822 = shalt.err (!%p819_p6)
}
 0x162   : > { %714 = dma.vmem_to_hbm [thread:$0]  (%p1007_p3), %s570_s8, 16, %s1115_s26, %s553_s11  }
 0x163   : > { %s1142_s7 = scalar_lea.hbm %s1197_s5, %s696_s15  ;;  %s1205_s16 = scalar_lea.vmem [#allocation6], %s1028_s10 }
 0x164   : > { %s582_s17 = sshll.u32 %s1205_s16, 4  ;;  %s557_s27 = scalar_lea.sflag [#allocation7], %s1028_s10  ;;  %s583_s17 = int_to_ptr.vmem [resolvable:$true] %s582_s17 }
 0x165   : > { %s823_s12 = scalar_lea.vmem %s583_s17, 16  ;;  %s927_s13 = smov [#allocation6]  }
 0x166   : > { %p824_p7 = scmp.ne.s32.totalorder %s583_s17, %s823_s12  ;;  %s827_s0 = sshll.u32 %s927_s13, 4  ;;  %s828_s0 = int_to_ptr.vmem [resolvable:$false] %s827_s0 }
 0x167   : > { %s829_s1 = scalar_lea.vmem %s828_s0, 32  ;;  %p830_p11 = scmp.lt.s32.totalorder %s583_s17, %s828_s0 }
 0x168   : > { %p825_p8 = pnand %p824_p7, %p1007_p3  ;;  %p831_p12 = scmp.lt.s32.totalorder %s829_s1, %s823_s12 }
 0x16a   : > { %p826_p10 = pneg %p825_p8  ;;  %p832_p13 = por %p831_p12, %p830_p11 }
 0x16c   : > { %p833_p0 = pnand %p832_p13, %p826_p10 }
 0x16e   : > { %836 = shalt.err (!%p833_p0)
}
 0x16f   : > { %s837_s22 = scalar_lea.hbm %s1142_s7, 16  ;;  %s841_s26 = scalar_lea.hbm %s1197_s5, 32 }
 0x170   : > { %p838_p1 = scmp.ne.s32.totalorder %s1142_s7, %s837_s22  ;;  %p842_p5 = scmp.lt.u32.totalorder %s1142_s7, %s1197_s5 }
 0x171   : > { %p843_p6 = scmp.lt.u32.totalorder %s841_s26, %s837_s22  ;;  %p845_p8 = scmp.lt.u32.totalorder %s837_s22, %s1142_s7 }
 0x172   : > { %p839_p2 = pnand %p838_p1, %p1007_p3 }
 0x173   : > { %p844_p7 = por %p843_p6, %p842_p5 }
 0x174   : > { %p840_p4 = pneg %p839_p2 }
 0x175   : > { %p846_p10 = por %p845_p8, %p844_p7 }
 0x177   : > { %p847_p11 = pnand %p846_p10, %p840_p4 }
 0x179   : > { %850 = shalt.err (!%p847_p11)
}
 0x17a   : > { %715 = dma.vmem_to_hbm [thread:$0]  (%p1007_p3), %s583_s17, 16, %s1142_s7, %s557_s27  }
 0x17b PF: > { %p725_p12 = scmp.ge.s32.totalorder %s921_s25, 2  ;;  %s594_s1 = sand.u32 1, %s893_s18  }
 0x17c   : > { %s595_s11 = scalar_lea.sflag [#allocation5], %s594_s1 }
 0x17d   : > { %p719_p13 = pnand %p725_p12, %p1017_p9 }
 0x17f   : > { %884 = dma.done.wait (!%p719_p13), %s595_s11, 16  }
 0x180   : > { %886 = vsyncadd (!%p719_p13), %s595_s11, 4294967280  ;;  %s603_s21 = scalar_lea.sflag [#allocation7], %s594_s1 }
 0x181   : > { %888 = dma.done.wait (!%p719_p13), %s603_s21, 16  }
 0x182   : > { %890 = vsyncadd (!%p719_p13), %s603_s21, 4294967280  ;;  %s22_s25 = sadd.s32 1, %s921_s25   ;;  %s1206_s18 = smov %s897_s19 }
 0x183   : > { %p19_p0 = scmp.ge.s32.totalorder %s22_s25, 6   ;;  %s1207_s19 = smov %s901_s20 }
 0x184   : > { %s1208_s20 = smov %s1025_s9  ;;  %s1209_s21 = smov %s913_s23 }
 0x185   : > { %s1210_s22 = smov %s917_s24  ;;  %s1211_s23 = smov %s1214_s28 }
 0x186   : > { %s1212_s24 = smov %s1218_s29  ;;  %21 = sbr.rel (!%p19_p0) target bundleno = 10 (0xa), region = 96 }
 0x18d   :  { %607 = vsyncpa [#allocation5], 1 }
 0x18e   :  { %609 = vsyncpa [#allocation5 + $0x1], 1 }
 0x18f   :  { %610 = vsyncpa [#allocation7], 1 }
 0x190   :  { %612 = vsyncpa [#allocation7 + $0x1], 1 }

</bundles_post_ra>
